<compile_context>
chip_gen: v6e
topology: v6e:2x2x1
jax: 0.10.0
libtpu: 0.0.40
codegen_flags: <defaults>
</compile_context>

<pallas_src>
import jax
import jax.numpy as jnp
from jax import lax
from jax.experimental import pallas as pl
from jax.experimental.pallas import tpu as pltpu

NEG_SLOPE = 0.01  # nn.LeakyReLU default negative_slope


def conv_block_pallas(x_nchw, weight, bias, *, stride, padding):
    """Conv2d(kernel_size, stride, padding, bias=True) + LeakyReLU.

    x_nchw: (N, Cin, H, W) f32
    weight: (Cout, Cin, KH, KW) f32  (PyTorch OIHW layout)
    bias:   (Cout,) f32
    returns (N, Cout, Ho, Wo) f32
    """
    N, Cin, H, W = x_nchw.shape
    Cout, _, KH, KW = weight.shape

    if stride != 1:
        # TODO(synk): fused strided-lane fast path; dispatch to XLA conv for stride>1.
        y = lax.conv_general_dilated(
            x_nchw, weight, (stride, stride),
            ((padding, padding), (padding, padding)),
            dimension_numbers=("NCHW", "OIHW", "NCHW"))
        y = y + bias.reshape(1, -1, 1, 1)
        return jnp.where(y > 0, y, NEG_SLOPE * y)

    Hp, Wp = H + 2 * padding, W + 2 * padding
    Ho, Wo = Hp - KH + 1, Wp - KW + 1
    J = Ho * Wp                      # uncropped lane width of each output tile
    K = Cin * KH * KW                # folded contraction dimension

    # Zero-pad spatially (+ a few extra bottom rows so every shifted length-J
    # lane slice stays in bounds), flatten (H, W) -> one lane axis.
    extra_rows = -(-(KW - 1) // Wp) if KW > 1 else 0
    L = (Hp + extra_rows) * Wp

    # ---- pick the per-grid-step image batch B ------------------------------
    #  * amortize per-step overhead: target ~1 MiB of streamed bytes per step
    #  * keep grid length >= 2 so both v7x TensorCores get work
    per_image_bytes = Cin * L * 2 + Cout * J * 4
    b_cap = max(1, (1 << 20) // per_image_bytes)
    b_balance = max(1, N // 2)
    B = max(1, min(b_cap, b_balance))
    G = pl.cdiv(N, B)                # grid steps
    Np = G * B                       # batch padded to a multiple of B

    x_pad = jnp.pad(
        x_nchw,
        ((0, Np - N), (0, 0), (padding, padding + extra_rows), (padding, padding)),
    )
    x_flat = x_pad.reshape(Np, Cin, L).astype(jnp.bfloat16)

    # weight (Cout, Cin, KH, KW) -> (Cout, KH*KW*Cin): column (kh*KW+kw)*Cin+cin
    # matches the row order of the im2col scratch built inside the kernel.
    w2 = jnp.transpose(weight, (0, 2, 3, 1)).reshape(Cout, K).astype(jnp.bfloat16)
    b_col = bias.reshape(Cout, 1).astype(jnp.float32)

    out_dtype = x_nchw.dtype  # keep f32 output to match nn.Conv2d semantics

    def kernel(x_ref, w_ref, b_ref, o_ref, patch_ref):
        def one_image(b):
            x = x_ref[b]                                   # (Cin, L) bf16
            # Fused im2col: KH*KW static lane-offset slices -> (K, J) scratch.
            for t in range(KH * KW):
                kh, kw = divmod(t, KW)
                off = kh * Wp + kw                         # static lane offset
                patch_ref[t * Cin:(t + 1) * Cin, :] = x[:, off:off + J]
            # One folded MXU matmul: (Cout, K) x (K, J) -> (Cout, J) f32.
            acc = jnp.dot(w_ref[...], patch_ref[...],
                          preferred_element_type=jnp.float32)
            acc = acc + b_ref[...]                          # bias (f32)
            acc = jnp.where(acc > 0, acc, NEG_SLOPE * acc)  # LeakyReLU (f32)
            o_ref[b] = acc.astype(o_ref.dtype)              # single lane-dense store

        if B <= 8:
            for b in range(B):                              # static unroll
                one_image(b)
        else:
            def body(b, carry):
                one_image(b)
                return carry
            lax.fori_loop(0, B, body, 0)

    out = pl.pallas_call(
        kernel,
        out_shape=jax.ShapeDtypeStruct((Np, Cout, J), out_dtype),
        grid_spec=pltpu.PrefetchScalarGridSpec(
            num_scalar_prefetch=0,
            grid=(G,),
            in_specs=[
                pl.BlockSpec((B, Cin, L), lambda g: (g, 0, 0)),   # B padded images
                pl.BlockSpec((Cout, K), lambda g: (0, 0)),        # folded weights
                pl.BlockSpec((Cout, 1), lambda g: (0, 0)),        # bias column
            ],
            out_specs=pl.BlockSpec((B, Cout, J), lambda g: (g, 0, 0)),
            scratch_shapes=[pltpu.VMEM((K, J), jnp.bfloat16)],    # im2col scratch
        ),
        compiler_params=pltpu.CompilerParams(
            dimension_semantics=("parallel",),
        ),
    )(x_flat, w2, b_col)

    # Crop: keep the first N images, drop the KW-1 garbage columns of each
    # output row (free reshape + slice in the wrapper; output is already NCHW).
    return out[:N].reshape(N, Cout, Ho, Wp)[:, :, :, :Wo]


def _reference(x, weight, bias, *, stride, padding, precision=None):
    y = lax.conv_general_dilated(
        x, weight,
        window_strides=(stride, stride),
        padding=((padding, padding), (padding, padding)),
        dimension_numbers=("NCHW", "OIHW", "NCHW"),
        precision=precision,
    )
    y = y + bias.reshape(1, -1, 1, 1)
    return jnp.where(y > 0, y, NEG_SLOPE * y)


if __name__ == "__main__":
    # conv_block(in_channels=4, out_channels=8, kernel_size=3, stride=1, padding=1)
    N, Cin, H, W = 2, 4, 16, 16
    Cout, KH, KW = 8, 3, 3
    stride, padding = 1, 1

    key = jax.random.PRNGKey(0)
    kx, kw_, kb = jax.random.split(key, 3)
    x = jax.random.normal(kx, (N, Cin, H, W), dtype=jnp.float32)
    weight = jax.random.normal(kw_, (Cout, Cin, KH, KW), dtype=jnp.float32) * 0.1
    bias = jax.random.normal(kb, (Cout,), dtype=jnp.float32) * 0.1

    out = conv_block_pallas(x, weight, bias, stride=stride, padding=padding)
    out = jax.block_until_ready(out)
    assert out.shape == (N, Cout, H, W)

    # Tight check: same bf16-rounded operands as the kernel streams, f32 accum.
    x_bf = x.astype(jnp.bfloat16).astype(jnp.float32)
    w_bf = weight.astype(jnp.bfloat16).astype(jnp.float32)
    ref_bf = _reference(x_bf, w_bf, bias, stride=stride, padding=padding,
                        precision=lax.Precision.HIGHEST)
    assert jnp.allclose(out, ref_bf, atol=2e-3, rtol=2e-3)

    # Sanity check vs. full-f32 module semantics (bf16-streaming tolerance).
    ref_f32 = _reference(x, weight, bias, stride=stride, padding=padding,
                         precision=lax.Precision.HIGHEST)
    assert jnp.allclose(out, ref_f32, atol=6e-2, rtol=6e-2)

    print("KERNEL_OK")
</pallas_src>

<mosaic_0001>
module attributes {stable_mosaic.version = 11 : i64} {
  func.func @kernel(%arg0: i32, %arg1: memref<1x4x342xbf16, #tpu.memory_space<vmem>>, %arg2: memref<8x36xbf16, #tpu.memory_space<vmem>>, %arg3: memref<8x1xf32, #tpu.memory_space<vmem>>, %arg4: memref<1x8x288xf32, #tpu.memory_space<vmem>>, %arg5: memref<36x288xbf16, #tpu.memory_space<vmem>>) attributes {dimension_semantics = [#tpu.dimension_semantics<parallel>], iteration_bounds = array<i64: 2>, scalar_prefetch = 0 : i64, scratch_operands = 1 : i64, tpu.core_type = #tpu.core_type<tc>, window_params = [{transform_indices = @transform_0, window_bounds = array<i64: 1, 4, 342>}, {pipeline_mode = #tpu.pipeline_mode<synchronous>, transform_indices = @transform_1, window_bounds = array<i64: 8, 36>}, {pipeline_mode = #tpu.pipeline_mode<synchronous>, transform_indices = @transform_2, window_bounds = array<i64: 8, 1>}, {transform_indices = @transform_3, window_bounds = array<i64: 1, 8, 288>}]} {
    %c0 = arith.constant 0 : index
    %c0_0 = arith.constant 0 : index
    %c0_1 = arith.constant 0 : index
    %0 = vector.load %arg1[%c0, %c0_0, %c0_1] : memref<1x4x342xbf16, #tpu.memory_space<vmem>>, vector<1x4x342xbf16>
    %1 = vector.shape_cast %0 : vector<1x4x342xbf16> to vector<4x342xbf16>
    %2 = vector.extract_strided_slice %1 {offsets = [0, 0], sizes = [4, 288], strides = [1, 1]} : vector<4x342xbf16> to vector<4x288xbf16>
    %c0_2 = arith.constant 0 : index
    %c0_3 = arith.constant 0 : index
    %3 = vector.load %arg5[%c0_2, %c0_3] : memref<36x288xbf16, #tpu.memory_space<vmem>>, vector<4x288xbf16>
    tpu.vector_store %arg5[%c0_2, %c0_3], %2 {strides = array<i32>} : memref<36x288xbf16, #tpu.memory_space<vmem>>, vector<4x288xbf16>,
    %4 = vector.extract_strided_slice %1 {offsets = [0, 1], sizes = [4, 288], strides = [1, 1]} : vector<4x342xbf16> to vector<4x288xbf16>
    %c4 = arith.constant 4 : index
    %c0_4 = arith.constant 0 : index
    %5 = vector.load %arg5[%c4, %c0_4] : memref<36x288xbf16, #tpu.memory_space<vmem>>, vector<4x288xbf16>
    tpu.vector_store %arg5[%c4, %c0_4], %4 {strides = array<i32>} : memref<36x288xbf16, #tpu.memory_space<vmem>>, vector<4x288xbf16>,
    %6 = vector.extract_strided_slice %1 {offsets = [0, 2], sizes = [4, 288], strides = [1, 1]} : vector<4x342xbf16> to vector<4x288xbf16>
    %c8 = arith.constant 8 : index
    %c0_5 = arith.constant 0 : index
    %7 = vector.load %arg5[%c8, %c0_5] : memref<36x288xbf16, #tpu.memory_space<vmem>>, vector<4x288xbf16>
    tpu.vector_store %arg5[%c8, %c0_5], %6 {strides = array<i32>} : memref<36x288xbf16, #tpu.memory_space<vmem>>, vector<4x288xbf16>,
    %8 = vector.extract_strided_slice %1 {offsets = [0, 18], sizes = [4, 288], strides = [1, 1]} : vector<4x342xbf16> to vector<4x288xbf16>
    %c12 = arith.constant 12 : index
    %c0_6 = arith.constant 0 : index
    %9 = vector.load %arg5[%c12, %c0_6] : memref<36x288xbf16, #tpu.memory_space<vmem>>, vector<4x288xbf16>
    tpu.vector_store %arg5[%c12, %c0_6], %8 {strides = array<i32>} : memref<36x288xbf16, #tpu.memory_space<vmem>>, vector<4x288xbf16>,
    %10 = vector.extract_strided_slice %1 {offsets = [0, 19], sizes = [4, 288], strides = [1, 1]} : vector<4x342xbf16> to vector<4x288xbf16>
    %c16 = arith.constant 16 : index
    %c0_7 = arith.constant 0 : index
    %11 = vector.load %arg5[%c16, %c0_7] : memref<36x288xbf16, #tpu.memory_space<vmem>>, vector<4x288xbf16>
    tpu.vector_store %arg5[%c16, %c0_7], %10 {strides = array<i32>} : memref<36x288xbf16, #tpu.memory_space<vmem>>, vector<4x288xbf16>,
    %12 = vector.extract_strided_slice %1 {offsets = [0, 20], sizes = [4, 288], strides = [1, 1]} : vector<4x342xbf16> to vector<4x288xbf16>
    %c20 = arith.constant 20 : index
    %c0_8 = arith.constant 0 : index
    %13 = vector.load %arg5[%c20, %c0_8] : memref<36x288xbf16, #tpu.memory_space<vmem>>, vector<4x288xbf16>
    tpu.vector_store %arg5[%c20, %c0_8], %12 {strides = array<i32>} : memref<36x288xbf16, #tpu.memory_space<vmem>>, vector<4x288xbf16>,
    %14 = vector.extract_strided_slice %1 {offsets = [0, 36], sizes = [4, 288], strides = [1, 1]} : vector<4x342xbf16> to vector<4x288xbf16>
    %c24 = arith.constant 24 : index
    %c0_9 = arith.constant 0 : index
    %15 = vector.load %arg5[%c24, %c0_9] : memref<36x288xbf16, #tpu.memory_space<vmem>>, vector<4x288xbf16>
    tpu.vector_store %arg5[%c24, %c0_9], %14 {strides = array<i32>} : memref<36x288xbf16, #tpu.memory_space<vmem>>, vector<4x288xbf16>,
    %16 = vector.extract_strided_slice %1 {offsets = [0, 37], sizes = [4, 288], strides = [1, 1]} : vector<4x342xbf16> to vector<4x288xbf16>
    %c28 = arith.constant 28 : index
    %c0_10 = arith.constant 0 : index
    %17 = vector.load %arg5[%c28, %c0_10] : memref<36x288xbf16, #tpu.memory_space<vmem>>, vector<4x288xbf16>
    tpu.vector_store %arg5[%c28, %c0_10], %16 {strides = array<i32>} : memref<36x288xbf16, #tpu.memory_space<vmem>>, vector<4x288xbf16>,
    %18 = vector.extract_strided_slice %1 {offsets = [0, 38], sizes = [4, 288], strides = [1, 1]} : vector<4x342xbf16> to vector<4x288xbf16>
    %c32 = arith.constant 32 : index
    %c0_11 = arith.constant 0 : index
    %19 = vector.load %arg5[%c32, %c0_11] : memref<36x288xbf16, #tpu.memory_space<vmem>>, vector<4x288xbf16>
    tpu.vector_store %arg5[%c32, %c0_11], %18 {strides = array<i32>} : memref<36x288xbf16, #tpu.memory_space<vmem>>, vector<4x288xbf16>,
    %c0_12 = arith.constant 0 : index
    %c0_13 = arith.constant 0 : index
    %20 = vector.load %arg2[%c0_12, %c0_13] : memref<8x36xbf16, #tpu.memory_space<vmem>>, vector<8x36xbf16>
    %c0_14 = arith.constant 0 : index
    %c0_15 = arith.constant 0 : index
    %21 = vector.load %arg5[%c0_14, %c0_15] : memref<36x288xbf16, #tpu.memory_space<vmem>>, vector<36x288xbf16>
    %cst = arith.constant dense<0.000000e+00> : vector<8x288xf32>
    %22 = tpu.matmul %20, %21, %cst {dimension_numbers = #tpu.dot_dimension_numbers<[1], [0], [0], [1], [0, 0, 1, 1], [], []>} : vector<8x36xbf16>, vector<36x288xbf16>, vector<8x288xf32> -> vector<8x288xf32>
    %c0_16 = arith.constant 0 : index
    %c0_17 = arith.constant 0 : index
    %23 = vector.load %arg3[%c0_16, %c0_17] : memref<8x1xf32, #tpu.memory_space<vmem>>, vector<8x1xf32>
    %24 = vector.broadcast %23 : vector<8x1xf32> to vector<8x288xf32>
    %25 = arith.addf %22, %24 : vector<8x288xf32>
    %cst_18 = arith.constant 0.000000e+00 : f32
    %26 = vector.broadcast %cst_18 : f32 to vector<8x288xf32>
    %27 = arith.cmpf ogt, %25, %26 : vector<8x288xf32>
    %cst_19 = arith.constant 0.00999999977 : f32
    %28 = vector.broadcast %cst_19 : f32 to vector<8x288xf32>
    %29 = arith.mulf %28, %25 : vector<8x288xf32>
    %30 = arith.select %27, %25, %29 : vector<8x288xi1>, vector<8x288xf32>
    %c0_20 = arith.constant 0 : index
    %c0_21 = arith.constant 0 : index
    %c0_22 = arith.constant 0 : index
    %31 = vector.load %arg4[%c0_20, %c0_21, %c0_22] : memref<1x8x288xf32, #tpu.memory_space<vmem>>, vector<1x8x288xf32>
    %32 = vector.shape_cast %31 : vector<1x8x288xf32> to vector<8x288xf32>
    %33 = vector.shape_cast %30 : vector<8x288xf32> to vector<1x8x288xf32>
    tpu.vector_store %arg4[%c0_20, %c0_21, %c0_22], %33 {strides = array<i32>} : memref<1x8x288xf32, #tpu.memory_space<vmem>>, vector<1x8x288xf32>,
    return
  }
  func.func @transform_0(%arg0: i32) -> (i32, i32, i32) {
    %c0_i32 = arith.constant 0 : i32
    %c0_i32_0 = arith.constant 0 : i32
    %c0_i32_1 = arith.constant 0 : i32
    return %arg0, %c0_i32, %c0_i32_0 : i32, i32, i32
  }
  func.func @transform_1(%arg0: i32) -> (i32, i32) {
    %c0_i32 = arith.constant 0 : i32
    %c0_i32_0 = arith.constant 0 : i32
    %c0_i32_1 = arith.constant 0 : i32
    return %c0_i32, %c0_i32_0 : i32, i32
  }
  func.func @transform_2(%arg0: i32) -> (i32, i32) {
    %c0_i32 = arith.constant 0 : i32
    %c0_i32_0 = arith.constant 0 : i32
    %c0_i32_1 = arith.constant 0 : i32
    return %c0_i32, %c0_i32_0 : i32, i32
  }
  func.func @transform_3(%arg0: i32) -> (i32, i32, i32) {
    %c0_i32 = arith.constant 0 : i32
    %c0_i32_0 = arith.constant 0 : i32
    %c0_i32_1 = arith.constant 0 : i32
    return %arg0, %c0_i32, %c0_i32_0 : i32, i32, i32
  }
}

</mosaic_0001>

<bundles_post_ra>
// kernel: tpu_custom_call.1
= control target key start
LH: loop header
LB: loop body
LE: loop exit
PB: predicated region body
PF: predicated region fallthrough
CT: control target
= control target key end

     0   :  { %8 = vsyncpa [#allocation4], 0  ;;  %s977_s0 = inlined_call_operand.hbm [shape: bf16[2,4,342], index: 0, kind: input, shape index: {}]   ;;  %s978_s1 = inlined_call_operand.vmem [shape: bf16[8,36], index: 1, kind: input, shape index: {}]   ;;  %s979_s2 = inlined_call_operand.vmem [shape: f32[8,1], index: 2, kind: input, shape index: {}]   ;;  %s980_s3 = inlined_call_operand.hbm [shape: f32[2,8,288], index: 3, kind: output, shape index: {}]  }
   0x1   :  { %10 = vsyncpa [#allocation4 + $0x1], 0 }
   0x2   :  { %11 = vsyncpa [#allocation5], 0 }
   0x3   :  { %13 = vsyncpa [#allocation5 + $0x1], 0  ;;  %s811_s12 = smov 0   ;;  %s813_s13 = smov 0  }
   0x4   :  { %s815_s14 = smov 0   ;;  %s817_s15 = smov 0  }
   0x5 LB: > { %s832_s16 = sadd.s32 4294967295, %s775_s15   ;;  %s574_s17 = sadd.s32 4294967294, %s775_s15   ;;  %s775_s15 = sphi %s817_s15, %s996_s15   ;;  %s771_s14 = sphi %s815_s14, %s995_s14   ;;  %s767_s13 = sphi %s813_s13, %s994_s13   ;;  %s763_s12 = sphi %s811_s12, %s993_s12  }
   0x6   : > { %s836_s18 = sadd.s32 1, %s775_s15   ;;  %s26_s19 = sadd.s32 1, %s771_s14 }
   0x7   : > { %s23_s20 = ssub.s32 %s775_s15, %s836_s18  ;;  %p33_p0 = scmp.ne.s32.totalorder %s771_s14, %s767_s13 }
   0x8   : > { %p24_p1 = scmp.eq.s32.totalorder %s23_s20, 0  ;;  %p34_p2 = scmp.eq.s32.totalorder %s775_s15, 0 }
   0x9   : > { %p39_p3 = scmp.ne.s32.totalorder %s767_s13, %s763_s12  ;;  %p40_p4 = scmp.eq.s32.totalorder %s832_s16, 0 }
   0xa   : > { %s848_s21 = scalar_select %p24_p1, %s771_s14, %s26_s19  }
   0xb   : > { %p35_p5 = por %p34_p2, %p33_p0  ;;  %p850_p6 = por %p40_p4, %p39_p3 }
   0xc   : > { %p105_p7 = scmp.eq.s32.totalorder %s832_s16, 1  ;;  %p111_p8 = scmp.eq.s32.totalorder %s574_s17, 1 }
   0xd   : > { %s983_s22 = scalar_select %p850_p6, 1, 0 }
   0xe   : > { %p626_p10 = scmp.lt.s32.totalorder %s775_s15, 2  ;;  %p857_p11 = por %p105_p7, %p33_p0 }
   0xf   : > { %p861_p12 = por %p111_p8, %p39_p3  ;;  %s137_s25 = sand.u32 1, %s771_s14  }
  0x10   : > { %s984_s23 = scalar_select %p857_p11, 1, 0 }
  0x11   : > { %s985_s24 = scalar_select %p861_p12, 1, 0 }
  0x12   : > { %s610_s26 = smul.u32 96, %s775_s15  ;;  %p872_p13 = pnand %p626_p10, %p35_p5 }
  0x13   : > { %s609_s27 = smul.u32 6, %s137_s25  ;;  %s138_s7 = scalar_lea.sflag [#allocation4], %s137_s25 }
  0x14   : > { %s870_s30 = scalar_lea.hbm %s977_s0, %s610_s26  ;;  %p685_p3 = pneg %p872_p13 }
  0x15   : > { %s141_s5 = scalar_lea.vmem [#allocation3], %s609_s27  ;;  %s683_s8 = scalar_lea.hbm %s870_s30, 96 }
  0x16   : > { %s149_s6 = sshll.u32 %s141_s5, 4  ;;  %p684_p2 = scmp.ne.s32.totalorder %s870_s30, %s683_s8  ;;  %s150_s6 = int_to_ptr.vmem [resolvable:$true] %s149_s6 }
  0x17   : > { %s688_s11 = scalar_lea.hbm %s977_s0, 192  ;;  %p689_p5 = scmp.lt.s32.totalorder %s870_s30, %s977_s0 }
  0x18   : > { %p686_p4 = pnand %p685_p3, %p684_p2  ;;  %p690_p8 = scmp.lt.s32.totalorder %s688_s11, %s683_s8 }
  0x1a   : > { %p687_p7 = pneg %p686_p4  ;;  %p691_p10 = por %p690_p8, %p689_p5 }
  0x1c   : > { %p692_p9 = pnand %p691_p10, %p687_p7 }
  0x1e   : > { %695 = shalt.err (!%p692_p9)
}
  0x1f   : > { %s696_s20 = scalar_lea.vmem %s150_s6, 96  ;;  %s777_s25 = smov [#allocation3]  }
  0x20   : > { %p697_p0 = scmp.ne.s32.totalorder %s150_s6, %s696_s20  ;;  %s701_s26 = sshll.u32 %s777_s25, 4  ;;  %s702_s26 = int_to_ptr.vmem [resolvable:$false] %s701_s26 }
  0x21   : > { %s703_s27 = scalar_lea.vmem %s702_s26, 192  ;;  %p704_p2 = scmp.lt.s32.totalorder %s150_s6, %s702_s26 }
  0x22   : > { %p699_p1 = pnand %p697_p0, %p685_p3  ;;  %p705_p4 = scmp.lt.s32.totalorder %s703_s27, %s696_s20 }
  0x24   : > { %p700_p12 = pneg %p699_p1  ;;  %p706_p11 = por %p705_p4, %p704_p2 }
  0x26   : > { %p707_p6 = pnand %p706_p11, %p700_p12 }
  0x28   : > { %710 = shalt.err (!%p707_p6)
}
  0x29   : > { %621 = dma.hbm_to_vmem [thread:$0]  (!%p872_p13), %s870_s30, 96, %s150_s6, %s138_s7  }
  0x2a   : > { %p987_p9 = scmp.lt.s32.totalorder %s775_s15, 3  ;;  %p988_p7 = scmp.ge.s32.totalorder %s775_s15, 1 }
  0x2c   : > { %p155_p5 = pnand %p988_p7, %p987_p9 }
  0x2d   : > { %s897_s28 = sand.u32 (!%p155_p5), 1, %s767_s13   ;;  %p989_p6 = scmp.ne.s32.totalorder (!%p155_p5), %s983_s22, 0 }
  0x2e   : > { %158 = sbr.rel (%p155_p5) target bundleno = 433 (0x1b1), region = 32  ;;  %s161_s5 = scalar_lea.sflag (!%p155_p5), [#allocation4], %s897_s28 }
  0x2f   : > { %s611_s29 = smul.u32 (!%p155_p5), 6, %s897_s28 }
  0x31   : > { %s164_s8 = scalar_lea.vmem (!%p155_p5), [#allocation3], %s611_s29 }
  0x33   : > { %754 = dma.done.wait (%p989_p6), %s161_s5, 96  }
  0x34   : > { %756 = vsyncadd (%p989_p6), %s161_s5, 4294967200  ;;  %v194_v0 = vlaneseq  ;;  %v778_v1 = vmov 1983009808   ;;  %v188_v6 = vld [vmem:[%s164_s8] sm:$0x3f]  ;;  %s779_s30 = smov 109  }
  0x35   : > { %v192_v2 = vunpack.c.l.s4 %v778_v1  ;;  %579 = vst.sshfl [vmem:[#allocation2] sm:$0xf pattern:$0x76325410] %v188_v6  ;;  %v190_v8 = vcombine.high %v188_v6, %v188_v6  ;;  %s780_s4 = smov 90   ;;  %vm208_vm0 = vcmask 254976   ;;  %v210_v10 = vcombine.low %v188_v6, %v188_v6 }
  0x36   : > { %v195_v3 = vshrl.u32 %v194_v0, 7  ;;  %s781_s22 = smov 108   ;;  %s782_s6 = smov 92   ;;  %v783_v11 = vmov 0.0   ;;  %vm787_vm1 = vmmov 0   ;;  %v789_v13 = vmov 0  }
  0x37   : > { %v193_v4 = vunpack.c.0.s8 %v192_v2  ;;  %599 = vmatprep.subr.bf16.mxu1 %v783_v11  ;;  %s784_s7 = smov 91   ;;  %s785_s9 = smov 127   ;;  %605 = vmatprep.mubr.msk.bf16.mxu1 %vm787_vm1, %v783_v11  ;;  %v335_v14 = vld [vmem:[%s979_s2] sm:$0xff]  ;;  %vm231_vm2 = vcmask 257026   ;;  %vm224_vm3 = vcmask 1043456   ;;  %vm266_vm4 = vcmask 891904  }
  0x38   : > { %s786_s10 = smov 126   ;;  %s788_s11 = smov 110   ;;  %427 = vmatprep.mubr.bf16.mxu0 %v789_v13  ;;  %672 = vset.pattern.permute.xlu0 %v789_v13  ;;  %vm318_vm5 = vcmask 736256   ;;  %vm292_vm6 = vcmask 752640   ;;  %vm279_vm7 = vcmask 883712   ;;  %vm385_vm8 = vcmask 1041408  }
  0x39   : > { %v196_v5 = vsub.s32 %v193_v4, %v195_v3  ;;  %vm305_vm9 = vcmask 744448   ;;  %vm226_vm10 = vcmask 1039360   ;;  %vm240_vm11 = vcmask 1031168   ;;  %s612_s26 = smul.u32 24, %s897_s28  ;;  %p990_p12 = scmp.ne.s32.totalorder %s984_s23, 0 }
  0x3a   : > { %vm253_vm12 = vcmask 900096   ;;  %vm381_vm13 = vcmask 293888   ;;  %vm487_vm14 = vcmask 261120   ;;  %s613_s29 = smul.u32 384, %s832_s16  ;;  %s490_s16 = scalar_lea.sflag [#allocation5], %s897_s28 }
  0x3b   : > { %v197_v7 = vrot.slane %v188_v6, %v196_v5  ;;  %v204_v9 = vrot.slane %v190_v8, %v196_v5  ;;  %v217_v12 = vrot.slane %v210_v10, %v196_v5  ;;  %s186_s27 = scalar_lea.vmem [#allocation6], %s612_s26 }
  0x3c   : > { %s504_s5 = sshll.u32 %s186_s27, 4  ;;  %s505_s5 = int_to_ptr.vmem [resolvable:$true] %s504_s5 }
  0x3d   : > { %259 = vrot.lane.b32.xlu1 %v197_v7, %s779_s30  ;;  %311 = vrot.lane.b32.xlu0 %v197_v7, %s780_s4  ;;  %209 = vst.msk [vmem:[#allocation2 + $0x8] sm:$0x3] %vm208_vm0, %v204_v9 }
  0x41   : > { %274 = vrot.lane.b32.xlu1 %v197_v7, %s781_s22  ;;  %285 = vrot.lane.b32.xlu0 %v197_v7, %s782_s6 }
  0x45   : > { %261 = vrot.lane.b32.xlu1 %v204_v9, %s779_s30  ;;  %313 = vrot.lane.b32.xlu0 %v204_v9, %s780_s4  ;;  %s940_s4 = scalar_lea.hbm %s980_s3, %s613_s29 }
  0x49   : > { %287 = vrot.lane.b32.xlu1 %v204_v9, %s782_s6  ;;  %272 = vrot.lane.b32.xlu0 %v217_v12, %s781_s22  ;;  %s711_s22 = scalar_lea.vmem %s505_s5, 384  ;;  %s790_s6 = smov [#allocation6]  }
  0x4a   : > { %p712_p11 = scmp.ne.s32.totalorder %s505_s5, %s711_s22 }
  0x4c   : > { %p713_p13 = pnand %p712_p11, %p990_p12 }
  0x4d   : > { %300 = vrot.lane.b32.xlu1 %v197_v7, %s784_s7  ;;  %298 = vrot.lane.b32.xlu0 %v217_v12, %s784_s7  ;;  %s715_s7 = sshll.u32 %s790_s6, 4  ;;  %s716_s7 = int_to_ptr.vmem [resolvable:$false] %s715_s7 }
  0x4e   : > { %p714_p0 = pneg %p713_p13  ;;  %p718_p1 = scmp.lt.s32.totalorder %s505_s5, %s716_s7 }
  0x51   : > { %220 = vrot.lane.b32.xlu1 %v197_v7, %s785_s9  ;;  %218 = vrot.lane.b32.xlu0 %v217_v12, %s785_s9  ;;  %s717_s9 = scalar_lea.vmem %s716_s7, 768 }
  0x52   : > { %p719_p3 = scmp.lt.s32.totalorder %s717_s9, %s711_s22 }
  0x54   : > { %p720_p8 = por %p719_p3, %p718_p1 }
  0x55   : > { %235 = vrot.lane.b32.xlu1 %v204_v9, %s786_s10  ;;  %233 = vrot.lane.b32.xlu0 %v197_v7, %s786_s10  ;;  %v324_v9 = vld [vmem:[%s978_s1] sm:$0xf] }
  0x56   : > { %p721_p10 = pnand %p720_p8, %p714_p0 }
  0x59   : > { %248 = vrot.lane.b32.xlu1 %v197_v7, %s788_s11  ;;  %246 = vrot.lane.b32.xlu0 %v217_v12, %s788_s11 }
  0x5d   : > { %338 = vperm.xlu0 %672, %v335_v14  }
  0xaf   : > { %v260_v15 = vpop.permute.xlu1 %259  ;;  %v312_v16 = vpop.permute.xlu0 %311 }
  0xb0   : > { %v263_v21 = vrot.slane %v260_v15, 4  ;;  %v315_v22 = vrot.slane %v312_v16, 4 }
  0xb3   : > { %v275_v17 = vpop.permute.xlu1 %274  ;;  %v286_v18 = vpop.permute.xlu0 %285 }
  0xb4   : > { %284 = vst.msk [vmem:[#allocation2 + $0x20] sm:$0xc] %vm231_vm2, %v275_v17  ;;  %v277_v31 = vrot.slane %v275_v17, 4  ;;  %v289_v32 = vrot.slane %v286_v18, 4 }
  0xb7   : > { %v262_v19 = vpop.permute.xlu1 %261  ;;  %v314_v20 = vpop.permute.xlu0 %313 }
  0xb8   : > { %v264_v23 = vrot.slane %v262_v19, 4  ;;  %271 = vst.msk [vmem:[#allocation2 + $0x20] sm:$0x3] %vm208_vm0, %v262_v19  ;;  %v316_v24 = vrot.slane %v314_v20, 4  ;;  %323 = vst.msk [vmem:[#allocation2 + $0x38] sm:$0x3] %vm208_vm0, %v314_v20 }
  0xba   : > { %v265_v25 = vsel %vm224_vm3, %v263_v21, %v264_v23  ;;  %v317_v26 = vsel %vm224_vm3, %v315_v22, %v316_v24 }
  0xbb   : > { %v267_v27 = vsel %vm266_vm4, %v260_v15, %v265_v25  ;;  %v319_v28 = vsel %vm318_vm5, %v312_v16, %v317_v26  ;;  %v288_v29 = vpop.permute.xlu1 %287  ;;  %v273_v30 = vpop.permute.xlu0 %272 }
  0xbc   : > { %270 = vst [vmem:[#allocation2 + $0x18] sm:$0x33] %v267_v27  ;;  %322 = vst [vmem:[#allocation2 + $0x30] sm:$0x33] %v319_v28  ;;  %v290_v33 = vrot.slane %v288_v29, 4  ;;  %v276_v34 = vrot.slane %v273_v30, 4 }
  0xbd   : > { %297 = vst.msk [vmem:[#allocation2 + $0x2c] sm:$0x3] %vm208_vm0, %v288_v29 }
  0xbe   : > { %v291_v35 = vsel %vm224_vm3, %v289_v32, %v290_v33  ;;  %v278_v36 = vsel %vm224_vm3, %v276_v34, %v277_v31 }
  0xbf   : > { %v293_v37 = vsel %vm292_vm6, %v286_v18, %v291_v35  ;;  %v280_v38 = vsel %vm279_vm7, %v273_v30, %v278_v36  ;;  %v301_v39 = vpop.permute.xlu1 %300  ;;  %v299_v40 = vpop.permute.xlu0 %298  ;;  %v673_v41 = vld [vmem:[#allocation2 + $0x38] ss:$0 sps:$4 sm:$0x33]  }
  0xc0   : > { %296 = vst [vmem:[#allocation2 + $0x24] sm:$0x33] %v293_v37  ;;  %283 = vst [vmem:[#allocation2 + $0x18] sm:$0xcc] %v280_v38  ;;  %v303_v42 = vrot.slane %v301_v39, 4  ;;  %v302_v43 = vrot.slane %v299_v40, 4 }
  0xc1   : > { %310 = vst.msk [vmem:[#allocation2 + $0x2c] sm:$0xc] %vm231_vm2, %v301_v39  ;;  %v393_v44 = vsel %vm385_vm8, %v673_v41, 0 }
  0xc2   : > { %v304_v45 = vsel %vm224_vm3, %v302_v43, %v303_v42  ;;  %600 = vmatpush3.bf16.msra.mxu1 %v393_v44 }
  0xc3   : > { %v306_v46 = vsel %vm305_vm9, %v299_v40, %v304_v45  ;;  %v221_v47 = vpop.permute.xlu1 %220  ;;  %v219_v48 = vpop.permute.xlu0 %218  ;;  %v333_v49 = vld [vmem:[#allocation2 + $0x30] sm:$0x33]  ;;  %601 = vmatprep.subr.bf16.mxu1 %v783_v11 }
  0xc4   : > { %309 = vst [vmem:[#allocation2 + $0x24] sm:$0xcc] %v306_v46  ;;  %v223_v50 = vrot.slane %v221_v47, 4  ;;  %232 = vst.msk [vmem:[#allocation2 + $0x8] sm:$0xc] %vm231_vm2, %v221_v47  ;;  %v222_v51 = vrot.slane %v219_v48, 4  ;;  %v587_v52 = vcombine.high %v333_v49, %v333_v49  ;;  %v586_v53 = vcombine.low %v333_v49, %v333_v49 }
  0xc6   : > { %v225_v54 = vsel %vm224_vm3, %v222_v51, %v223_v50  ;;  %589 = vmatprep.subr.msk.bf16.mxu0 %vm385_vm8, %v587_v52  ;;  %v387_v55 = vsel %vm385_vm8, %v586_v53, 0 }
  0xc7   : > { %v227_v56 = vsel %vm226_vm10, %v219_v48, %v225_v54  ;;  %v236_v57 = vpop.permute.xlu1 %235  ;;  %406 = vmatpush1.bf16.msra.mxu0 %v387_v55  ;;  %v234_v58 = vpop.permute.xlu0 %233 }
  0xc8   : > { %v675_v59 = vld [vmem:[#allocation2 + $0x20] ss:$12 sps:$4 sm:$0xff]   ;;  %230 = vst [vmem:[#allocation2] sm:$0xcc] %v227_v56  ;;  %v238_v60 = vrot.slane %v236_v57, 4  ;;  %v237_v61 = vrot.slane %v234_v58, 4 }
  0xc9   : > { %245 = vst.msk [vmem:[#allocation2 + $0x14] sm:$0x3] %vm208_vm0, %v236_v57  ;;  %602 = vmatpush3.bf16.msra.mxu1 %v675_v59 }
  0xca   : > { %v239_v62 = vsel %vm224_vm3, %v237_v61, %v238_v60  ;;  %603 = vmatprep.subr.bf16.mxu1 %v783_v11 }
  0xcb   : > { %v241_v63 = vsel %vm240_vm11, %v234_v58, %v239_v62  ;;  %v249_v0 = vpop.permute.xlu1 %248  ;;  %v247_v1 = vpop.permute.xlu0 %246  ;;  %v676_v2 = vld [vmem:[#allocation2 + $0x1c] ss:$12 sps:$4 sm:$0xff]   ;;  %v678_v3 = vld [vmem:[#allocation2 + $0x18] ss:$12 sps:$4 sm:$0xff]  }
  0xcc   : > { %244 = vst [vmem:[#allocation2 + $0xc] sm:$0x33] %v241_v63  ;;  %v251_v4 = vrot.slane %v249_v0, 4  ;;  %258 = vst.msk [vmem:[#allocation2 + $0x14] sm:$0xc] %vm231_vm2, %v249_v0  ;;  %v250_v5 = vrot.slane %v247_v1, 4  ;;  %407 = vmatprep.subr.bf16.mxu0 %v676_v2 }
  0xcd   : > { %408 = vmatpush1.bf16.msra.mxu0 %v678_v3 }
  0xce   : > { %v252_v6 = vsel %vm224_vm3, %v250_v5, %v251_v4 }
  0xcf   : > { %v254_v7 = vsel %vm253_vm12, %v247_v1, %v252_v6 }
  0xd0   : > { %257 = vst [vmem:[#allocation2 + $0xc] sm:$0xcc] %v254_v7 }
  0xd3   : > { %v679_v8 = vld [vmem:[#allocation2 + $0x8] ss:$12 sps:$4 sm:$0xff]  }
  0xd4   : > { %604 = vmatpush3.bf16.msra.mxu1 %v679_v8 }
  0xd7   : > { %v680_v10 = vld [vmem:[#allocation2 + $0x4] ss:$12 sps:$4 sm:$0xff]   ;;  %v682_v11 = vld [vmem:[#allocation2] ss:$12 sps:$4 sm:$0xff]   ;;  %606 = vmatmul.mubr.msk.bf16.vlgmr.msra.gmra.mxu1 %vm381_vm13, %v324_v9 }
  0xd8   : > { %409 = vmatprep.subr.bf16.mxu0 %v680_v10  ;;  %v339_v12 = vpop.permute.xlu0 %338 }
  0xd9   : > { %410 = vmatpush1.bf16.msra.mxu0 %v682_v11 }
  0xdc   : > { %590 = vmatmul.mubr.msk.bf16.vlgmr.msra.gmra.mxu0 %vm381_vm13, %v324_v9 }
 0x197   : > { %v470_v13 = vpop.f32.mrf.mxu1 }
 0x198   : > { %v471_v14 = vadd.f32 %v470_v13, %v339_v12 }
 0x199   : > { %v607_v15 = vpop.f32.mrf.mxu1 }
 0x19a   : > { %vm478_vm15 = vcmp.gt.f32.partialorder %v471_v14, 0.0  ;;  %v481_v16 = vmul.f32 0.01, %v471_v14 }
 0x19b   : > { %v473_v17 = vpop.f32.mrf.mxu1 }
 0x19c   : > { %v429_v18 = vpop.f32.mrf.mxu0  ;;  %v484_v19 = vsel %vm478_vm15, %v471_v14, %v481_v16 }
 0x19d   : > { %v430_v20 = vadd.f32 %v429_v18, %v339_v12  ;;  %488 = vst.msk [vmem:[%s186_s27 + $0x10] sm:$0xff] %vm487_vm14, %v484_v19  ;;  %v608_v21 = vpop.f32.mrf.mxu1 }
 0x19e   : > { %v431_v22 = vpop.f32.mrf.mxu0 }
 0x19f   : > { %vm476_vm0 = vcmp.gt.f32.partialorder %v430_v20, 0.0  ;;  %v479_v23 = vmul.f32 0.01, %v430_v20  ;;  %v432_v24 = vadd.f32 %v431_v22, %v339_v12 }
 0x1a0   : > { %v433_v25 = vpop.f32.mrf.mxu0 }
 0x1a1   : > { %v482_v26 = vsel %vm476_vm0, %v430_v20, %v479_v23  ;;  %vm477_vm1 = vcmp.gt.f32.partialorder %v432_v24, 0.0  ;;  %v480_v27 = vmul.f32 0.01, %v432_v24 }
 0x1a2   : > { %485 = vst [vmem:[%s186_s27] sm:$0xff] %v482_v26  ;;  %v434_v28 = vpop.f32.mrf.mxu0 }
 0x1a3   : > { %v483_v29 = vsel %vm477_vm1, %v432_v24, %v480_v27 }
 0x1a4   : > { %486 = vst [vmem:[%s186_s27 + $0x8] sm:$0xff] %v483_v29 }
 0x1a5   : > { %724 = shalt.err (!%p721_p10)
}
 0x1a6   : > { %s725_s10 = scalar_lea.hbm %s940_s4, 384  ;;  %s729_s17 = scalar_lea.hbm %s980_s3, 768 }
 0x1a7   : > { %p726_p2 = scmp.ne.s32.totalorder %s940_s4, %s725_s10  ;;  %p730_p7 = scmp.lt.s32.totalorder %s940_s4, %s980_s3 }
 0x1a8   : > { %p731_p5 = scmp.lt.s32.totalorder %s729_s17, %s725_s10 }
 0x1a9   : > { %p727_p4 = pnand %p726_p2, %p990_p12 }
 0x1aa   : > { %p732_p6 = por %p731_p5, %p730_p7 }
 0x1ab   : > { %p728_p9 = pneg %p727_p4 }
 0x1ad   : > { %p733_p11 = pnand %p732_p6, %p728_p9 }
 0x1af   : > { %736 = shalt.err (!%p733_p11)
}
 0x1b0   : > { %616 = dma.vmem_to_hbm [thread:$0]  (%p990_p12), %s505_s5, 384, %s940_s4, %s490_s16  }
 0x1b1 PF: > { %s516_s25 = sand.u32 1, %s763_s12   ;;  %p991_p13 = scmp.ne.s32.totalorder %s985_s24, 0 }
 0x1b2   : > { %p992_p0 = scmp.ge.s32.totalorder %s775_s15, 2  ;;  %s517_s26 = scalar_lea.sflag [#allocation5], %s516_s25 }
 0x1b4   : > { %p623_p1 = pnand %p992_p0, %p991_p13 }
 0x1b6   : > { %p624_p3 = pneg %p623_p1 }
 0x1b8   : > { %758 = dma.done.wait (%p624_p3), %s517_s26, 384  }
 0x1b9   : > { %760 = vsyncadd (%p624_p3), %s517_s26, 4294966912  ;;  %p16_p8 = scmp.ge.s32.totalorder %s836_s18, 4   ;;  %s993_s12 = smov %s767_s13 }
 0x1ba   : > { %s994_s13 = smov %s771_s14  ;;  %s995_s14 = smov %s848_s21 }
 0x1bb   : > { %s996_s15 = smov %s836_s18  ;;  %18 = sbr.rel (!%p16_p8) target bundleno = 5 (0x5), region = 77 }
 0x1c0   :  { %522 = vsyncpa [#allocation4], 1 }
 0x1c1   :  { %524 = vsyncpa [#allocation4 + $0x1], 1 }
 0x1c2   :  { %525 = vsyncpa [#allocation5], 1 }
 0x1c3   :  { %527 = vsyncpa [#allocation5 + $0x1], 1 }

</bundles_post_ra>
